<compile_context>
chip_gen: v7x
topology: tpu7x:2x2x1
jax: 0.10.0
libtpu: 0.0.40
codegen_flags: <defaults>
</compile_context>

<pallas_src>
import copy

import jax
import jax.numpy as jnp
from jax.experimental import pallas as pl
from jax.experimental.pallas import tpu as pltpu


# --------------------------------------------------------------------------
# Pallas kernel: elementwise identity copy of one lane-dense tile.
# --------------------------------------------------------------------------
def _identity_kernel(x_ref, o_ref):
    o_ref[...] = x_ref[...]


_LANE = 1024                       # last-dim width: 8 vregs, multiple of 128
_TARGET_TILE_BYTES = 2 * 1024 * 1024   # ~2 MiB per tile (HBM-roofline sweet spot)


def pallas_identity(x: jax.Array) -> jax.Array:
    """Identity pass-through on TPU via a lane-dense, tiled Pallas copy kernel."""
    orig_shape = x.shape
    dtype = x.dtype
    itemsize = jnp.dtype(dtype).itemsize

    flat = x.reshape(-1)
    n = flat.shape[0]

    # Rows of width _LANE needed to hold the flattened array.
    rows = -(-n // _LANE)

    # Tile rows: target ~2 MiB per tile, multiple of 8 (f32 sublane), capped so
    # 2 input + 2 output double-buffers stay far below v7x's scoped VMEM.
    tile_r = max(8, (_TARGET_TILE_BYTES // (_LANE * itemsize)) // 8 * 8)
    if rows <= tile_r:
        tile_r = -(-rows // 8) * 8          # smallest multiple of 8 covering rows

    # Pad so the grid divides evenly (simplest + keeps (8,128)-aligned blocks).
    padded_rows = -(-rows // tile_r) * tile_r
    padded_n = padded_rows * _LANE
    if padded_n != n:
        flat = jnp.pad(flat, (0, padded_n - n))
    x2 = flat.reshape(padded_rows, _LANE)

    grid = (padded_rows // tile_r,)

    out = pl.pallas_call(
        _identity_kernel,
        out_shape=jax.ShapeDtypeStruct(x2.shape, dtype),
        grid=grid,
        in_specs=[pl.BlockSpec((tile_r, _LANE), lambda i: (i, 0))],
        out_specs=pl.BlockSpec((tile_r, _LANE), lambda i: (i, 0)),
        input_output_aliases={0: 0},   # donate the (intermediate) input buffer
        compiler_params=pltpu.CompilerParams(
            dimension_semantics=("parallel",),
        ),
    )(x2)

    return out.reshape(-1)[:n].reshape(orig_shape)


# --------------------------------------------------------------------------
# Faithful port of _BaseModule / BaseModule dispatch semantics.
# --------------------------------------------------------------------------
class _BaseModule:
    def __init__(self, init_cfg=None):
        self.initialized = False
        if init_cfg is not None:
            init_cfg = copy.deepcopy(init_cfg)
            if isinstance(init_cfg, dict):
                init_cfg = [init_cfg]
        self.init_cfg = init_cfg

    def init_weights(self):
        # TODO(synk): the mmcv-style `initialize(self, cfg)` registry, logger,
        # and nn.Module children recursion have no Pallas/JAX equivalent here;
        # the base class is parameter-free so there is nothing to initialize.
        if not self.initialized:
            self.initialized = True


class BaseModule(_BaseModule):
    """JAX equivalent of the PyTorch BaseModule (parameter-free dispatcher)."""

    def __init__(self, init_cfg=None):
        _BaseModule.__init__(self, init_cfg)
        self.is_dummy = False
        self.training = True  # mirrors nn.Module default

    def __call__(self, *args, **kwargs):
        return self.forward(*args, **kwargs)

    # Exact dispatch semantics of the PyTorch forward().
    def forward(self, *args, **kwargs):
        if kwargs.pop("is_dummy", self.is_dummy):
            return self.forward_dummy(*args, **kwargs)
        training = kwargs.pop("training", self.training)
        if training:
            return self.forward_train(*args, **kwargs)
        else:
            return self.forward_predict(*args, **kwargs)

    def forward_train(self, *args, **kwargs):
        raise NotImplementedError

    def forward_predict(self, *args, **kwargs):
        raise NotImplementedError

    def forward_dummy(self, *args, **kwargs):
        raise NotImplementedError


# --------------------------------------------------------------------------
# Minimal concrete subclass so the Pallas path is actually exercised.
# (BaseModule itself defines no compute — subclasses supply forward_*.)
# --------------------------------------------------------------------------
class IdentityModule(BaseModule):
    def forward_train(self, x):
        return pallas_identity(x)

    def forward_predict(self, x):
        return pallas_identity(x)

    def forward_dummy(self, x):
        return pallas_identity(x)


if __name__ == "__main__":
    key = jax.random.PRNGKey(0)
    x = jax.random.normal(key, (2, 4, 16, 16), dtype=jnp.float32)  # NCHW

    # 1) Base-class forward raises NotImplementedError (exact semantics).
    base = BaseModule()
    try:
        base(x)
        raise AssertionError("BaseModule.forward_train should have raised")
    except NotImplementedError:
        pass

    # 2) Concrete subclass exercises all three dispatch branches through the
    #    optimized Pallas identity kernel.
    mod = IdentityModule()
    mod.init_weights()

    y_train = mod(x)                      # training=True path
    y_pred = mod(x, training=False)       # predict path
    y_dummy = mod(x, is_dummy=True)       # dummy path

    jax.block_until_ready((y_train, y_pred, y_dummy))

    assert y_train.shape == x.shape and y_train.dtype == x.dtype
    assert jnp.allclose(y_train, x)
    assert jnp.allclose(y_pred, x)
    assert jnp.allclose(y_dummy, x)

    # 3) Also sanity-check a larger, non-aligned shape to exercise the padded
    #    multi-tile grid path (several grid steps, ragged tail).
    x_big = jax.random.normal(jax.random.PRNGKey(1), (3, 5, 37, 129), jnp.float32)
    y_big = mod(x_big)
    jax.block_until_ready(y_big)
    assert y_big.shape == x_big.shape and jnp.allclose(y_big, x_big)

    print("KERNEL_OK")
</pallas_src>

<mosaic_0001>
module attributes {stable_mosaic.version = 11 : i64} {
  func.func @_identity_kernel(%arg0: i32, %arg1: memref<8x1024xf32, #tpu.memory_space<vmem>>, %arg2: memref<8x1024xf32, #tpu.memory_space<vmem>>) attributes {dimension_semantics = [#tpu.dimension_semantics<parallel>], iteration_bounds = array<i64: 1>, scalar_prefetch = 0 : i64, scratch_operands = 0 : i64, tpu.core_type = #tpu.core_type<tc>, window_params = [{transform_indices = @transform_0, window_bounds = array<i64: 8, 1024>}, {transform_indices = @transform_1, window_bounds = array<i64: 8, 1024>}]} {
    %c0 = arith.constant 0 : index
    %c0_0 = arith.constant 0 : index
    %0 = vector.load %arg1[%c0, %c0_0] : memref<8x1024xf32, #tpu.memory_space<vmem>>, vector<8x1024xf32>
    %c0_1 = arith.constant 0 : index
    %c0_2 = arith.constant 0 : index
    %1 = vector.load %arg2[%c0_1, %c0_2] : memref<8x1024xf32, #tpu.memory_space<vmem>>, vector<8x1024xf32>
    tpu.vector_store %arg2[%c0_1, %c0_2], %0 {strides = array<i32>} : memref<8x1024xf32, #tpu.memory_space<vmem>>, vector<8x1024xf32>,
    return
  }
  func.func @transform_0(%arg0: i32) -> (i32, i32) {
    %c0_i32 = arith.constant 0 : i32
    %c0_i32_0 = arith.constant 0 : i32
    return %arg0, %c0_i32 : i32, i32
  }
  func.func @transform_1(%arg0: i32) -> (i32, i32) {
    %c0_i32 = arith.constant 0 : i32
    %c0_i32_0 = arith.constant 0 : i32
    return %arg0, %c0_i32 : i32, i32
  }
}

</mosaic_0001>

<bundles_post_ra>
// kernel: tpu_custom_call.1
= control target key start
LH: loop header
LB: loop body
LE: loop exit
PB: predicated region body
PF: predicated region fallthrough
CT: control target
= control target key end

     0   :  { %6 = vsyncpa [#allocation3], 0  ;;  %s138_s0 = inlined_call_operand.hbm [shape: f32[8,1024], index: 0, kind: input, shape index: {}, may-alias: {0,1}]   ;;  %s139_s1 = inlined_call_operand.hbm [shape: f32[8,1024], index: 1, kind: output, shape index: {}, may-alias: {0,1}]  }
   0x1   :  { %7 = vsyncpa [#allocation4], 0  ;;  %s102_s6 = smov [#allocation2]   ;;  %s54_s10 = scalar_lea.hbm %s138_s0, 1024 }
   0x2   :  { %s14_s7 = sshll.u32 %s102_s6, 4  ;;  %p55_p0 = scmp.ne.s32.totalorder %s138_s0, %s54_s10  ;;  %s15_s7 = int_to_ptr.vmem [resolvable:$true] %s14_s7 }
   0x3   :  { %p58_p1 = scmp.lt.u32.totalorder %s54_s10, %s138_s0 }
   0x5   :  { %p60_p2 = pnand %p58_p1, %p55_p0 }
   0x7   :  { %63 = shalt.err (!%p60_p2)
}
   0x8   :  { %s64_s15 = scalar_lea.vmem %s15_s7, 1024  ;;  %p69_p4 = scmp.lt.s32.totalorder %s15_s7, %s15_s7 }
   0x9   :  { %p65_p3 = scmp.ne.s32.totalorder %s15_s7, %s64_s15  ;;  %p70_p5 = scmp.lt.s32.totalorder %s64_s15, %s64_s15 }
   0xb   :  { %p71_p6 = por %p70_p5, %p69_p4 }
   0xd   :  { %p72_p7 = pnand %p71_p6, %p65_p3 }
   0xf   :  { %75 = shalt.err (!%p72_p7)
}
  0x10   :  { %17 = dma.hbm_to_vmem [thread:$0]  %s138_s0, 1024, %s15_s7, [#allocation3]  }
  0x11   :  { %98 = dma.done.wait [#allocation3], 1024  }
  0x12   :  { %99 = vsyncadd [#allocation3], 4294966272  ;;  %s103_s18 = smov [#allocation5]   ;;  %v21_v0 = vld [vmem:[#allocation2] sm:$0xff]  ;;  %v22_v1 = vld [vmem:[#allocation2 + $0x8] sm:$0xff] }
  0x13   :  { %s43_s19 = sshll.u32 %s103_s18, 4  ;;  %v23_v2 = vld [vmem:[#allocation2 + $0x10] sm:$0xff]  ;;  %29 = vst [vmem:[#allocation5] sm:$0xff] %v21_v0  ;;  %30 = vst [vmem:[#allocation5 + $0x8] sm:$0xff] %v22_v1  ;;  %v24_v3 = vld [vmem:[#allocation2 + $0x18] sm:$0xff]  ;;  %s44_s19 = int_to_ptr.vmem [resolvable:$true] %s43_s19 }
  0x14   :  { %31 = vst [vmem:[#allocation5 + $0x10] sm:$0xff] %v23_v2  ;;  %v25_v4 = vld [vmem:[#allocation2 + $0x20] sm:$0xff]  ;;  %v26_v5 = vld [vmem:[#allocation2 + $0x28] sm:$0xff]  ;;  %32 = vst [vmem:[#allocation5 + $0x18] sm:$0xff] %v24_v3  ;;  %s76_s0 = scalar_lea.vmem %s44_s19, 1024  ;;  %p81_p9 = scmp.lt.s32.totalorder %s44_s19, %s44_s19 }
  0x15   :  { %33 = vst [vmem:[#allocation5 + $0x20] sm:$0xff] %v25_v4  ;;  %34 = vst [vmem:[#allocation5 + $0x28] sm:$0xff] %v26_v5  ;;  %v27_v6 = vld [vmem:[#allocation2 + $0x30] sm:$0xff]  ;;  %v28_v7 = vld [vmem:[#allocation2 + $0x38] sm:$0xff]  ;;  %p77_p8 = scmp.ne.s32.totalorder %s44_s19, %s76_s0  ;;  %p82_p10 = scmp.lt.s32.totalorder %s76_s0, %s76_s0 }
  0x16   :  { %35 = vst [vmem:[#allocation5 + $0x30] sm:$0xff] %v27_v6  ;;  %36 = vst [vmem:[#allocation5 + $0x38] sm:$0xff] %v28_v7 }
  0x17   :  { %p83_p11 = por %p82_p10, %p81_p9 }
  0x19   :  { %p84_p12 = pnand %p83_p11, %p77_p8 }
  0x1b   :  { %87 = shalt.err (!%p84_p12)
}
  0x1c   :  { %s88_s22 = scalar_lea.hbm %s139_s1, 1024 }
  0x1d   :  { %p89_p13 = scmp.ne.s32.totalorder %s139_s1, %s88_s22  ;;  %p92_p0 = scmp.lt.u32.totalorder %s88_s22, %s139_s1 }
  0x1f   :  { %p94_p1 = pnand %p92_p0, %p89_p13 }
  0x21   :  { %97 = shalt.err (!%p94_p1)
}
  0x22   :  { %46 = dma.vmem_to_hbm [thread:$0]  %s44_s19, 1024, %s139_s1, [#allocation4]  }
  0x23   :  { %100 = dma.done.wait [#allocation4], 1024  }
  0x24   :  { %101 = vsyncadd [#allocation4], 4294966272 }
  0x25   :  { %50 = vsyncpa [#allocation3], 1 }
  0x26   :  { %51 = vsyncpa [#allocation4], 1 }

</bundles_post_ra>
